<compile_context>
chip_gen: v7x
topology: tpu7x:2x2x1
jax: 0.10.0
libtpu: 0.0.40
codegen_flags: <defaults>
</compile_context>

<pallas_src>
import functools

import jax
import jax.numpy as jnp
from jax import lax
from jax.experimental import pallas as pl
from jax.experimental.pallas import tpu as pltpu


def _ce_label_smooth_kernel(
    x_ref,      # (TB, TC) logits tile, native dtype, VMEM
    t_ref,      # (TB, 1) int32 labels tile, VMEM
    o_ref,      # (TB, 1) f32 per-row loss (written on last class step), VMEM
    m_ref,      # (TB, 1) f32 running max          (scratch)
    l_ref,      # (TB, 1) f32 running sum(exp(x-m)) (scratch)
    sx_ref,     # (TB, 1) f32 running sum_c x       (scratch)
    xt_ref,     # (TB, 1) f32 x at target class     (scratch)
    *,
    num_classes,
    batch_size,
    epsilon,
    block_b,
    block_c,
    class_ragged,
    batch_ragged,
):
    k = pl.program_id(1)
    nk = pl.num_programs(1)

    @pl.when(k == 0)
    def _init():
        m_ref[...] = jnp.full_like(m_ref, -jnp.inf)
        l_ref[...] = jnp.zeros_like(l_ref)
        sx_ref[...] = jnp.zeros_like(sx_ref)
        xt_ref[...] = jnp.zeros_like(xt_ref)

    # Upcast AFTER the (possibly bf16) tile is already in VMEM.
    x = x_ref[...].astype(jnp.float32)                       # (TB, TC)
    tb, tc = x.shape

    # Global class index of each lane in this tile.
    col = k * block_c + lax.broadcasted_iota(jnp.int32, (tb, tc), 1)

    if class_ragged:
        valid = col < num_classes
        x_for_max = jnp.where(valid, x, -jnp.inf)             # -inf for max/exp
        x_for_sum = jnp.where(valid, x, 0.0)                   # 0 for sum_c x
    else:
        valid = None
        x_for_max = x
        x_for_sum = x

    # Online logsumexp (flash-style running max / running denominator).
    m_prev = m_ref[...]
    m_new = jnp.maximum(m_prev, jnp.max(x_for_max, axis=1, keepdims=True))
    alpha = jnp.exp(m_prev - m_new)
    l_ref[...] = alpha * l_ref[...] + jnp.sum(
        jnp.exp(x_for_max - m_new), axis=1, keepdims=True
    )
    m_ref[...] = m_new

    # Running sum of logits (for the eps/C smoothing term).
    sx_ref[...] += jnp.sum(x_for_sum, axis=1, keepdims=True)

    # Logit at the target class: the matching lane lives in exactly one tile.
    is_tgt = col == t_ref[...]
    if class_ragged:
        is_tgt = is_tgt & valid
    xt_ref[...] += jnp.sum(jnp.where(is_tgt, x, 0.0), axis=1, keepdims=True)

    @pl.when(k == nk - 1)
    def _finalize():
        lse = m_ref[...] + jnp.log(l_ref[...])                 # (TB, 1)
        # Closed-form per-row label-smoothed CE (no onehot / smooth tensors):
        #   (1-eps)*(lse - x_t) + (eps/C)*(C*lse - sum_c x)
        row_loss = (1.0 - epsilon) * (lse - xt_ref[...]) + (
            epsilon / num_classes
        ) * (num_classes * lse - sx_ref[...])
        if batch_ragged:
            i = pl.program_id(0)
            row = i * block_b + lax.broadcasted_iota(jnp.int32, (tb, 1), 0)
            row_loss = jnp.where(row < batch_size, row_loss, 0.0)
        o_ref[...] = row_loss


def cross_entropy_loss_pallas(logits, targets, *, epsilon=0.1,
                              block_b=None, block_c=None):
    """logits: (B, C) float (any float dtype); targets: (B,) int class indices."""
    B, C = logits.shape

    # Tile sizing: batch tile multiple of 8 sublanes, class tile multiple of
    # 128 lanes (or the full dim for small arrays).  Sized conservatively so
    # double-buffered input blocks stay far below v7x's 64 MiB VMEM.
    if block_b is None:
        block_b = B if B <= 256 else 256
    if block_c is None:
        block_c = C if C <= 512 else 512
    assert block_b == B or block_b % 8 == 0, block_b
    assert block_c == C or block_c % 128 == 0, block_c

    nb = pl.cdiv(B, block_b)
    nc = pl.cdiv(C, block_c)
    padded_b = nb * block_b

    class_ragged = (C % block_c) != 0
    batch_ragged = (B % block_b) != 0

    targets2d = targets.astype(jnp.int32).reshape(B, 1)

    kernel = functools.partial(
        _ce_label_smooth_kernel,
        num_classes=C,
        batch_size=B,
        epsilon=float(epsilon),
        block_b=block_b,
        block_c=block_c,
        class_ragged=class_ragged,
        batch_ragged=batch_ragged,
    )

    grid_spec = pltpu.PrefetchScalarGridSpec(
        num_scalar_prefetch=0,
        grid=(nb, nc),
        in_specs=[
            pl.BlockSpec((block_b, block_c), lambda i, k: (i, k)),  # logits
            pl.BlockSpec((block_b, 1), lambda i, k: (i, 0)),        # labels
        ],
        out_specs=pl.BlockSpec((block_b, 1), lambda i, k: (i, 0)),  # row losses
        scratch_shapes=[pltpu.VMEM((block_b, 1), jnp.float32)] * 4,
    )

    row_losses = pl.pallas_call(
        kernel,
        out_shape=jax.ShapeDtypeStruct((padded_b, 1), jnp.float32),
        grid_spec=grid_spec,
        compiler_params=pltpu.CompilerParams(
            dimension_semantics=("parallel", "arbitrary"),
            vmem_limit_bytes=32 * 1024 * 1024,
        ),
    )(logits, targets2d)   # NOTE: no f32 cast in the wrapper — native dtype DMA

    # (-smooth * log_probs).mean(0).sum() == sum_b row_loss_b / B
    return jnp.sum(row_losses) / B


def cross_entropy_loss_ref(logits, targets, *, epsilon=0.1):
    """Pure-JAX reference matching the PyTorch module (is_mixup=False path)."""
    B, C = logits.shape
    log_probs = jax.nn.log_softmax(logits.astype(jnp.float32), axis=1)
    onehot = jax.nn.one_hot(targets, C, dtype=jnp.float32)
    smooth = (1.0 - epsilon) * onehot + epsilon / C
    return (-smooth * log_probs).mean(0).sum()


if __name__ == "__main__":
    epsilon = 0.1
    key = jax.random.PRNGKey(0)
    k1, k2, k3, k4 = jax.random.split(key, 4)

    # Tiled / pipelined path: 2 batch tiles x 4 class tiles (last tile ragged).
    B, C = 16, 500
    logits = jax.random.normal(k1, (B, C), dtype=jnp.float32)
    targets = jax.random.randint(k2, (B,), 0, C, dtype=jnp.int32)
    loss = cross_entropy_loss_pallas(
        logits, targets, epsilon=epsilon, block_b=8, block_c=128
    )
    loss = jax.block_until_ready(loss)
    loss_ref = cross_entropy_loss_ref(logits, targets, epsilon=epsilon)
    assert jnp.allclose(loss, loss_ref, atol=1e-4, rtol=1e-5), (loss, loss_ref)

    # Small single-block path (toy shape, full-extent blocks).
    B2, C2 = 8, 16
    logits2 = jax.random.normal(k3, (B2, C2), dtype=jnp.float32)
    targets2 = jax.random.randint(k4, (B2,), 0, C2, dtype=jnp.int32)
    loss2 = jax.block_until_ready(
        cross_entropy_loss_pallas(logits2, targets2, epsilon=epsilon)
    )
    loss_ref2 = cross_entropy_loss_ref(logits2, targets2, epsilon=epsilon)
    assert jnp.allclose(loss2, loss_ref2, atol=1e-4, rtol=1e-5), (loss2, loss_ref2)

    print("KERNEL_OK")
</pallas_src>

<mosaic_0001>
module attributes {stable_mosaic.version = 11 : i64} {
  func.func @_ce_label_smooth_kernel(%arg0: i32, %arg1: i32, %arg2: memref<8x128xf32, #tpu.memory_space<vmem>>, %arg3: memref<8x1xi32, #tpu.memory_space<vmem>>, %arg4: memref<8x1xf32, #tpu.memory_space<vmem>>, %arg5: memref<8x1xf32, #tpu.memory_space<vmem>>, %arg6: memref<8x1xf32, #tpu.memory_space<vmem>>, %arg7: memref<8x1xf32, #tpu.memory_space<vmem>>, %arg8: memref<8x1xf32, #tpu.memory_space<vmem>>) attributes {dimension_semantics = [#tpu.dimension_semantics<parallel>, #tpu.dimension_semantics<arbitrary>], iteration_bounds = array<i64: 2, 4>, scalar_prefetch = 0 : i64, scratch_operands = 4 : i64, tpu.core_type = #tpu.core_type<tc>, window_params = [{transform_indices = @transform_0, window_bounds = array<i64: 8, 128>}, {transform_indices = @transform_1, window_bounds = array<i64: 8, 1>}, {transform_indices = @transform_2, window_bounds = array<i64: 8, 1>}]} {
    %c0_i32 = arith.constant 0 : i32
    %0 = arith.cmpi eq, %arg1, %c0_i32 : i32
    %1 = arith.extui %0 : i1 to i32
    %c0_i32_0 = arith.constant 0 : i32
    %2 = arith.cmpi ne, %1, %c0_i32_0 : i32
    scf.if %2 {
      %cst_27 = arith.constant 0xFF800000 : f32
      %49 = vector.broadcast %cst_27 : f32 to vector<8x1xf32>
      %c0_28 = arith.constant 0 : index
      %c0_29 = arith.constant 0 : index
      %50 = vector.load %arg5[%c0_28, %c0_29] : memref<8x1xf32, #tpu.memory_space<vmem>>, vector<8x1xf32>
      tpu.vector_store %arg5[%c0_28, %c0_29], %49 {strides = array<i32>} : memref<8x1xf32, #tpu.memory_space<vmem>>, vector<8x1xf32>,
      %cst_30 = arith.constant 0.000000e+00 : f32
      %51 = vector.broadcast %cst_30 : f32 to vector<8x1xf32>
      %c0_31 = arith.constant 0 : index
      %c0_32 = arith.constant 0 : index
      %52 = vector.load %arg6[%c0_31, %c0_32] : memref<8x1xf32, #tpu.memory_space<vmem>>, vector<8x1xf32>
      tpu.vector_store %arg6[%c0_31, %c0_32], %51 {strides = array<i32>} : memref<8x1xf32, #tpu.memory_space<vmem>>, vector<8x1xf32>,
      %cst_33 = arith.constant 0.000000e+00 : f32
      %53 = vector.broadcast %cst_33 : f32 to vector<8x1xf32>
      %c0_34 = arith.constant 0 : index
      %c0_35 = arith.constant 0 : index
      %54 = vector.load %arg7[%c0_34, %c0_35] : memref<8x1xf32, #tpu.memory_space<vmem>>, vector<8x1xf32>
      tpu.vector_store %arg7[%c0_34, %c0_35], %53 {strides = array<i32>} : memref<8x1xf32, #tpu.memory_space<vmem>>, vector<8x1xf32>,
      %cst_36 = arith.constant 0.000000e+00 : f32
      %55 = vector.broadcast %cst_36 : f32 to vector<8x1xf32>
      %c0_37 = arith.constant 0 : index
      %c0_38 = arith.constant 0 : index
      %56 = vector.load %arg8[%c0_37, %c0_38] : memref<8x1xf32, #tpu.memory_space<vmem>>, vector<8x1xf32>
      tpu.vector_store %arg8[%c0_37, %c0_38], %55 {strides = array<i32>} : memref<8x1xf32, #tpu.memory_space<vmem>>, vector<8x1xf32>,
    } else {
    }
    %c0 = arith.constant 0 : index
    %c0_1 = arith.constant 0 : index
    %3 = vector.load %arg2[%c0, %c0_1] : memref<8x128xf32, #tpu.memory_space<vmem>>, vector<8x128xf32>
    %c128_i32 = arith.constant 128 : i32
    %4 = arith.muli %arg1, %c128_i32 : i32
    %5 = tpu.iota {dimensions = array<i32: 1>} : vector<8x128xi32>
    %6 = vector.broadcast %4 : i32 to vector<8x128xi32>
    %7 = arith.addi %6, %5 : vector<8x128xi32>
    %c500_i32 = arith.constant 500 : i32
    %8 = vector.broadcast %c500_i32 : i32 to vector<8x128xi32>
    %9 = arith.cmpi slt, %7, %8 : vector<8x128xi32>
    %cst = arith.constant 0xFF800000 : f32
    %10 = vector.broadcast %cst : f32 to vector<8x128xf32>
    %11 = arith.select %9, %3, %10 : vector<8x128xi1>, vector<8x128xf32>
    %cst_2 = arith.constant 0.000000e+00 : f32
    %12 = vector.broadcast %cst_2 : f32 to vector<8x128xf32>
    %13 = arith.select %9, %3, %12 : vector<8x128xi1>, vector<8x128xf32>
    %c0_3 = arith.constant 0 : index
    %c0_4 = arith.constant 0 : index
    %14 = vector.load %arg5[%c0_3, %c0_4] : memref<8x1xf32, #tpu.memory_space<vmem>>, vector<8x1xf32>
    %cst_5 = arith.constant dense<0xFF800000> : vector<8xf32>
    %15 = vector.multi_reduction <maximumf>, %11, %cst_5 [1] : vector<8x128xf32> to vector<8xf32>
    %16 = vector.shape_cast %15 : vector<8xf32> to vector<8x1xf32>
    %17 = arith.maximumf %14, %16 : vector<8x1xf32>
    %18 = arith.subf %14, %17 : vector<8x1xf32>
    %19 = math.exp %18 : vector<8x1xf32>
    %c0_6 = arith.constant 0 : index
    %c0_7 = arith.constant 0 : index
    %20 = vector.load %arg6[%c0_6, %c0_7] : memref<8x1xf32, #tpu.memory_space<vmem>>, vector<8x1xf32>
    %21 = arith.mulf %19, %20 : vector<8x1xf32>
    %22 = vector.broadcast %17 : vector<8x1xf32> to vector<8x128xf32>
    %23 = arith.subf %11, %22 : vector<8x128xf32>
    %24 = math.exp %23 : vector<8x128xf32>
    %cst_8 = arith.constant dense<0.000000e+00> : vector<8xf32>
    %25 = vector.multi_reduction <add>, %24, %cst_8 [1] : vector<8x128xf32> to vector<8xf32>
    %26 = vector.shape_cast %25 : vector<8xf32> to vector<8x1xf32>
    %27 = arith.addf %21, %26 : vector<8x1xf32>
    %c0_9 = arith.constant 0 : index
    %c0_10 = arith.constant 0 : index
    %28 = vector.load %arg6[%c0_9, %c0_10] : memref<8x1xf32, #tpu.memory_space<vmem>>, vector<8x1xf32>
    tpu.vector_store %arg6[%c0_9, %c0_10], %27 {strides = array<i32>} : memref<8x1xf32, #tpu.memory_space<vmem>>, vector<8x1xf32>,
    %c0_11 = arith.constant 0 : index
    %c0_12 = arith.constant 0 : index
    %29 = vector.load %arg5[%c0_11, %c0_12] : memref<8x1xf32, #tpu.memory_space<vmem>>, vector<8x1xf32>
    tpu.vector_store %arg5[%c0_11, %c0_12], %17 {strides = array<i32>} : memref<8x1xf32, #tpu.memory_space<vmem>>, vector<8x1xf32>,
    %c0_13 = arith.constant 0 : index
    %c0_14 = arith.constant 0 : index
    %30 = vector.load %arg7[%c0_13, %c0_14] : memref<8x1xf32, #tpu.memory_space<vmem>>, vector<8x1xf32>
    %cst_15 = arith.constant dense<0.000000e+00> : vector<8xf32>
    %31 = vector.multi_reduction <add>, %13, %cst_15 [1] : vector<8x128xf32> to vector<8xf32>
    %32 = vector.shape_cast %31 : vector<8xf32> to vector<8x1xf32>
    %33 = arith.addf %30, %32 : vector<8x1xf32>
    %c0_16 = arith.constant 0 : index
    %c0_17 = arith.constant 0 : index
    %34 = vector.load %arg7[%c0_16, %c0_17] : memref<8x1xf32, #tpu.memory_space<vmem>>, vector<8x1xf32>
    tpu.vector_store %arg7[%c0_16, %c0_17], %33 {strides = array<i32>} : memref<8x1xf32, #tpu.memory_space<vmem>>, vector<8x1xf32>,
    %c0_18 = arith.constant 0 : index
    %c0_19 = arith.constant 0 : index
    %35 = vector.load %arg3[%c0_18, %c0_19] : memref<8x1xi32, #tpu.memory_space<vmem>>, vector<8x1xi32>
    %36 = vector.broadcast %35 : vector<8x1xi32> to vector<8x128xi32>
    %37 = arith.cmpi eq, %7, %36 : vector<8x128xi32>
    %38 = arith.andi %37, %9 : vector<8x128xi1>
    %c0_20 = arith.constant 0 : index
    %c0_21 = arith.constant 0 : index
    %39 = vector.load %arg8[%c0_20, %c0_21] : memref<8x1xf32, #tpu.memory_space<vmem>>, vector<8x1xf32>
    %cst_22 = arith.constant 0.000000e+00 : f32
    %40 = vector.broadcast %cst_22 : f32 to vector<8x128xf32>
    %41 = arith.select %38, %3, %40 : vector<8x128xi1>, vector<8x128xf32>
    %cst_23 = arith.constant dense<0.000000e+00> : vector<8xf32>
    %42 = vector.multi_reduction <add>, %41, %cst_23 [1] : vector<8x128xf32> to vector<8xf32>
    %43 = vector.shape_cast %42 : vector<8xf32> to vector<8x1xf32>
    %44 = arith.addf %39, %43 : vector<8x1xf32>
    %c0_24 = arith.constant 0 : index
    %c0_25 = arith.constant 0 : index
    %45 = vector.load %arg8[%c0_24, %c0_25] : memref<8x1xf32, #tpu.memory_space<vmem>>, vector<8x1xf32>
    tpu.vector_store %arg8[%c0_24, %c0_25], %44 {strides = array<i32>} : memref<8x1xf32, #tpu.memory_space<vmem>>, vector<8x1xf32>,
    %c3_i32 = arith.constant 3 : i32
    %46 = arith.cmpi eq, %arg1, %c3_i32 : i32
    %47 = arith.extui %46 : i1 to i32
    %c0_i32_26 = arith.constant 0 : i32
    %48 = arith.cmpi ne, %47, %c0_i32_26 : i32
    scf.if %48 {
      %c0_27 = arith.constant 0 : index
      %c0_28 = arith.constant 0 : index
      %49 = vector.load %arg5[%c0_27, %c0_28] : memref<8x1xf32, #tpu.memory_space<vmem>>, vector<8x1xf32>
      %c0_29 = arith.constant 0 : index
      %c0_30 = arith.constant 0 : index
      %50 = vector.load %arg6[%c0_29, %c0_30] : memref<8x1xf32, #tpu.memory_space<vmem>>, vector<8x1xf32>
      %51 = math.log %50 : vector<8x1xf32>
      %52 = arith.addf %49, %51 : vector<8x1xf32>
      %c0_31 = arith.constant 0 : index
      %c0_32 = arith.constant 0 : index
      %53 = vector.load %arg8[%c0_31, %c0_32] : memref<8x1xf32, #tpu.memory_space<vmem>>, vector<8x1xf32>
      %54 = arith.subf %52, %53 : vector<8x1xf32>
      %cst_33 = arith.constant 0.899999976 : f32
      %55 = vector.broadcast %cst_33 : f32 to vector<8x1xf32>
      %56 = arith.mulf %55, %54 : vector<8x1xf32>
      %cst_34 = arith.constant 5.000000e+02 : f32
      %57 = vector.broadcast %cst_34 : f32 to vector<8x1xf32>
      %58 = arith.mulf %57, %52 : vector<8x1xf32>
      %c0_35 = arith.constant 0 : index
      %c0_36 = arith.constant 0 : index
      %59 = vector.load %arg7[%c0_35, %c0_36] : memref<8x1xf32, #tpu.memory_space<vmem>>, vector<8x1xf32>
      %60 = arith.subf %58, %59 : vector<8x1xf32>
      %cst_37 = arith.constant 2.000000e-04 : f32
      %61 = vector.broadcast %cst_37 : f32 to vector<8x1xf32>
      %62 = arith.mulf %61, %60 : vector<8x1xf32>
      %63 = arith.addf %56, %62 : vector<8x1xf32>
      %c0_38 = arith.constant 0 : index
      %c0_39 = arith.constant 0 : index
      %64 = vector.load %arg4[%c0_38, %c0_39] : memref<8x1xf32, #tpu.memory_space<vmem>>, vector<8x1xf32>
      tpu.vector_store %arg4[%c0_38, %c0_39], %63 {strides = array<i32>} : memref<8x1xf32, #tpu.memory_space<vmem>>, vector<8x1xf32>,
    } else {
    }
    return
  }
  func.func @transform_0(%arg0: i32, %arg1: i32) -> (i32, i32) {
    %c0_i32 = arith.constant 0 : i32
    return %arg0, %arg1 : i32, i32
  }
  func.func @transform_1(%arg0: i32, %arg1: i32) -> (i32, i32) {
    %c0_i32 = arith.constant 0 : i32
    %c0_i32_0 = arith.constant 0 : i32
    return %arg0, %c0_i32 : i32, i32
  }
  func.func @transform_2(%arg0: i32, %arg1: i32) -> (i32, i32) {
    %c0_i32 = arith.constant 0 : i32
    %c0_i32_0 = arith.constant 0 : i32
    return %arg0, %c0_i32 : i32, i32
  }
}

</mosaic_0001>

<bundles_post_ra>
// kernel: tpu_custom_call.1
= control target key start
LH: loop header
LB: loop body
LE: loop exit
PB: predicated region body
PF: predicated region fallthrough
CT: control target
= control target key end

     0   :  { %7 = vsyncpa [#allocation7], 0  ;;  %s740_s0 = inlined_call_operand.hbm [shape: f32[16,500], index: 0, kind: input, shape index: {}]   ;;  %s741_s1 = inlined_call_operand.vmem [shape: s32[16,1], index: 1, kind: input, shape index: {}]   ;;  %s742_s2 = inlined_call_operand.vmem [shape: f32[16,1], index: 2, kind: output, shape index: {}]  }
   0x1   :  { %9 = vsyncpa [#allocation7 + $0x1], 0  ;;  %s573_s9 = smov 0   ;;  %s575_s10 = smov 0  }
   0x2   :  { %s577_s11 = smov 0   ;;  %s579_s12 = smov 0  }
   0x3   :  { %s581_s13 = smov 0   ;;  %s583_s14 = smov 0  }
   0x4   :  { %s585_s15 = smov 0   ;;  %s587_s16 = smov 0  }
   0x5 LB: > { %s358_s17 = sadd.s32 4294967295, %s552_s16   ;;  %s24_s18 = sadd.s32 1, %s544_s14  ;;  %s552_s16 = sphi %s587_s16, %s15_s16   ;;  %s548_s15 = sphi %s585_s15, %s754_s15   ;;  %s544_s14 = sphi %s583_s14, %s753_s14   ;;  %s540_s13 = sphi %s581_s13, %s752_s13   ;;  %s536_s12 = sphi %s579_s12, %s751_s12   ;;  %s532_s11 = sphi %s577_s11, %s750_s11   ;;  %s528_s10 = sphi %s575_s10, %s749_s10   ;;  %s524_s9 = sphi %s573_s9, %s748_s9  }
   0x6   : > { %p25_p0 = scmp.ge.s32.totalorder %s24_s18, 4  ;;  %s27_s19 = sadd.s32 1, %s548_s15 }
   0x7   : > { %s36_s20 = sadd.s32 1, %s532_s11  ;;  %p43_p1 = scmp.ne.s32.totalorder %s532_s11, %s528_s10 }
   0x8   : > { %s756_s18 = smov (%p25_p0, %s24_s18), 0  ;;  %s758_s19 = smov (!%p25_p0, %s27_s19), %s548_s15 }
   0x9   : > { %s32_s21 = ssub.s32 %s544_s14, %s756_s18  ;;  %p44_p2 = scmp.eq.s32.totalorder %s552_s16, 0 }
   0xa   : > { %p29_p3 = scmp.ge.s32.totalorder %s758_s19, 2  ;;  %p49_p4 = scmp.ne.s32.totalorder %s528_s10, %s524_s9 }
   0xb   : > { %p624_p5 = por %p44_p2, %p43_p1  ;;  %p50_p6 = scmp.eq.s32.totalorder %s358_s17, 0 }
   0xc   : > { %s760_s19 = smov (%p29_p3, %s758_s19), 0  ;;  %p380_p8 = scmp.lt.s32.totalorder %s552_s16, 8 }
   0xd   : > { %p630_p7 = por %p50_p6, %p49_p4  ;;  %s31_s24 = ssub.s32 %s548_s15, %s760_s19 }
   0xe   : > { %s33_s25 = sor.u32 %s32_s21, %s31_s24  ;;  %s125_s26 = sand.u32 1, %s532_s11  }
   0xf   : > { %p34_p9 = scmp.eq.s32.totalorder %s33_s25, 0  ;;  %s362_s27 = sshll.u32 %s125_s26, 3 }
  0x10   : > { %s363_s28 = sshll.u32 %s548_s15, 2  ;;  %s129_s4 = scalar_lea.vmem [#allocation6], %s362_s27 }
  0x11   : > { %s640_s29 = scalar_select %p34_p9, %s532_s11, %s36_s20  }
  0x12   : > { %s134_s30 = sadd.s32 %s544_s14, %s363_s28  ;;  %s138_s5 = sshll.u32 %s129_s4, 4  ;;  %s648_s5 = int_to_ptr.vmem [resolvable:$true] %s138_s5 }
  0x13   : > { %s364_s3 = sshll.u32 %s134_s30, 7  ;;  %p654_p10 = pnand %p380_p8, %p624_p5 }
  0x14   : > { %s646_s8 = scalar_lea.hbm %s740_s0, %s364_s3  ;;  %s126_s17 = scalar_lea.sflag [#allocation7], %s125_s26 }
  0x15   : > { %s456_s20 = scalar_lea.hbm %s646_s8, 128  ;;  %p458_p0 = pneg %p654_p10 }
  0x16   : > { %p457_p13 = scmp.ne.s32.totalorder %s646_s8, %s456_s20  ;;  %s461_s24 = scalar_lea.hbm %s740_s0, 1024 }
  0x17   : > { %p462_p3 = scmp.lt.u32.totalorder %s646_s8, %s740_s0  ;;  %p463_p4 = scmp.lt.u32.totalorder %s461_s24, %s456_s20 }
  0x18   : > { %p459_p1 = pnand %p458_p0, %p457_p13  ;;  %p465_p6 = scmp.lt.u32.totalorder %s456_s20, %s646_s8 }
  0x19   : > { %p464_p5 = por %p463_p4, %p462_p3 }
  0x1a   : > { %p460_p2 = pneg %p459_p1 }
  0x1b   : > { %p466_p8 = por %p465_p6, %p464_p5 }
  0x1d   : > { %p467_p9 = pnand %p466_p8, %p460_p2 }
  0x1f   : > { %470 = shalt.err (!%p467_p9)
}
  0x20   : > { %s471_s26 = scalar_lea.vmem %s648_s5, 128  ;;  %s554_s28 = smov [#allocation6]  }
  0x21   : > { %p472_p13 = scmp.ne.s32.totalorder %s648_s5, %s471_s26  ;;  %s476_s30 = sshll.u32 %s554_s28, 4  ;;  %s477_s30 = int_to_ptr.vmem [resolvable:$false] %s476_s30 }
  0x22   : > { %s478_s3 = scalar_lea.vmem %s477_s30, 256  ;;  %p479_p12 = scmp.lt.s32.totalorder %s648_s5, %s477_s30 }
  0x23   : > { %p474_p1 = pnand %p472_p13, %p458_p0  ;;  %p480_p3 = scmp.lt.s32.totalorder %s478_s3, %s471_s26 }
  0x25   : > { %p475_p11 = pneg %p474_p1  ;;  %p481_p4 = por %p480_p3, %p479_p12 }
  0x27   : > { %p482_p5 = pnand %p481_p4, %p475_p11 }
  0x29   : > { %485 = shalt.err (!%p482_p5)
}
  0x2a   : > { %379 = dma.hbm_to_vmem [thread:$0]  (!%p654_p10), %s646_s8, 128, %s648_s5, %s126_s17  }
  0x2b   : > { %p746_p2 = scmp.lt.s32.totalorder %s552_s16, 9  ;;  %p747_p6 = scmp.ge.s32.totalorder %s552_s16, 1 }
  0x2d   : > { %p151_p0 = pnand %p747_p6, %p746_p2 }
  0x2e   : > { %s156_s4 = sand.u32 (!%p151_p0), 1, %s528_s10  }
  0x2f   : > { %154 = sbr.rel (%p151_p0) target bundleno = 535 (0x217), region = 28  ;;  %s366_s6 = sshll.u32 (!%p151_p0), %s156_s4, 3 }
  0x30   : > { %s157_s7 = scalar_lea.sflag (!%p151_p0), [#allocation7], %s156_s4  ;;  %s160_s20 = scalar_lea.vmem (!%p151_p0), [#allocation6], %s366_s6 }
  0x36   : > { %519 = dma.done.wait (%p630_p7), %s157_s7, 128  }
  0x37   : > { %521 = vsyncadd (%p630_p7), %s157_s7, 4294967168  ;;  %p184_p11 = scmp.lt.s32.totalorder %s540_s13, 1  ;;  %p369_p10 = scmp.ne.s32.totalorder %s536_s12, 0 }
  0x38   : > { %vm196_vm0 = vcmask (!%p369_p10), 7168   ;;  %v555_v0 = vmov (!%p369_p10), -inf   ;;  %v556_v1 = vmov (!%p369_p10), 0.0  }
  0x39   : > { %s762_s13 = smov (!%p184_p11, %s540_s13), 1  ;;  %195 = sbr.rel (%p369_p10) target bundleno = 64 (0x40), region = 36 }
  0x3a   : > { %s367_s5 = sshll.u32 %s762_s13, 3  ;;  %197 = vst.msk [vmem:[#allocation2] sm:$0xff] (!%p369_p10), %vm196_vm0, %v555_v0  ;;  %198 = vst.msk [vmem:[#allocation3] sm:$0xff] (!%p369_p10), %vm196_vm0, %v556_v1 }
  0x3b   : > { %s187_s17 = scalar_lea.vmem %s741_s1, %s367_s5  ;;  %s702_s24 = scalar_lea.vmem %s742_s2, %s367_s5  ;;  %199 = vst.msk [vmem:[#allocation4] sm:$0xff] (!%p369_p10), %vm196_vm0, %v556_v1  ;;  %200 = vst.msk [vmem:[#allocation5] sm:$0xff] (!%p369_p10), %vm196_vm0, %v556_v1 }
  0x40 PF: > { %s370_s13 = sshll.u32 %s536_s12, 7  ;;  %v203_v2 = vlaneseq  ;;  %v201_v5 = vld [vmem:[%s160_s20] sm:$0xff]  ;;  %v557_v8 = vmov 0   ;;  %vm230_vm2 = vcmask 7168   ;;  %p371_p7 = scmp.ne.s32.totalorder %s536_s12, 3 }
  0x41   : > { %v205_v3 = vstv %s370_s13  ;;  %448 = vset.pattern.permute.xlu0 %v557_v8  ;;  %449 = vset.pattern.permute.xlu1 %v557_v8  ;;  %v238_v9 = vld [vmem:[%s187_s17] sm:$0xff]  ;;  %v217_v26 = vld [vmem:[#allocation3] sm:$0xff] }
  0x42   : > { %v204_v4 = vand.u32 127, %v203_v2  ;;  %240 = vperm.xlu1 %449, %v238_v9   ;;  %v210_v10 = vld [vmem:[#allocation2] sm:$0xff]  ;;  %v233_v21 = vld [vmem:[#allocation4] sm:$0xff]  ;;  %v244_v30 = vld [vmem:[#allocation5] sm:$0xff] }
  0x44   : > { %v206_v6 = vadd.s32 %v205_v3, %v204_v4 }
  0x46   : > { %vm207_vm1 = vcmp.lt.s32.totalorder %v206_v6, 500 }
  0x47   : > { %v208_v7 = vsel %vm207_vm1, %v201_v5, -inf  ;;  %v209_v14 = vsel %vm207_vm1, %v201_v5, 0.0 }
  0x48   : > { %211 = vmax.xlane.f32.xlu0 %v208_v7 }
  0x66   : > { %234 = vadd.xlane.f32.xlu1 %v209_v14 }
  0xc1   : > { %v241_v18 = vpop.permute.xlu1 %240 }
  0xc2   : > { %vm242_vm3 = vcmp.eq.s32.totalorder %v206_v6, %v241_v18 }
  0xc3   : > { %vm243_vm4 = vmand %vm242_vm3, %vm207_vm1 }
  0xc4   : > { %v245_v20 = vsel %vm243_vm4, %v201_v5, 0.0 }
  0xd5   : > { %v212_v11 = vpop.xlane.xlu0 %211 }
  0xd6   : > { %v213_v12 = vmax.f32 %v210_v10, %v212_v11 }
  0xd8   : > { %v214_v13 = vsub.f32 %v210_v10, %v213_v12  ;;  %232 = vst.msk [vmem:[#allocation2] sm:$0xff] %vm230_vm2, %v213_v12  ;;  %221 = vperm.xlu0 %448, %v213_v12  }
  0xda   : > { %v215_v24 = vmul.f32 1.442695, %v214_v13 }
  0xdf   : > { %v254_v35 = vld [vmem:[#allocation2] sm:$0xff] (!%p371_p7) }
  0xf3   : > { %v235_v22 = vpop.xlane.xlu1 %234 }
  0xf4   : > { %v236_v23 = vadd.f32 %v235_v22, %v233_v21 }
  0xf6   : > { %237 = vst.msk [vmem:[#allocation4] sm:$0xff] %vm230_vm2, %v236_v23 }
  0xfd   : > { %v263_v39 = vld [vmem:[#allocation4] sm:$0xff] (!%p371_p7) }
 0x157   : > { %v222_v15 = vpop.permute.xlu0 %221 }
 0x158   : > { %v224_v16 = vsub.f32 %v208_v7, %v222_v15 }
 0x15a   : > { %v225_v17 = vmul.f32 1.442695, %v224_v16 }
 0x15c   : > { %450 = vpow2.f32 %v225_v17 }
 0x15d   : > { %452 = vpow2.f32 %v215_v24 }
 0x166   : > { %v451_v19 = vpop.eup %450 }
 0x167   : > { %227 = vadd.xlane.f32.xlu1 %v451_v19  ;;  %v453_v25 = vpop.eup %452 }
 0x168   : > { %v218_v27 = vmul.f32 %v453_v25, %v217_v26 }
 0x16b   : > { %246 = vadd.xlane.f32.xlu1 %v245_v20 }
 0x1f4   : > { %v228_v28 = vpop.xlane.xlu1 %227 }
 0x1f5   : > { %v229_v29 = vadd.f32 %v228_v28, %v218_v27  ;;  %253 = sbr.rel (%p371_p7) target bundleno = 535 (0x217), region = 40 }
 0x1f7   : > { %231 = vst.msk [vmem:[#allocation3] sm:$0xff] %vm230_vm2, %v229_v29 }
 0x1f8   : > { %v247_v31 = vpop.xlane.xlu1 %246 }
 0x1f9   : > { %v248_v32 = vadd.f32 %v247_v31, %v244_v30 }
 0x1fb   : > { %249 = vst.msk [vmem:[#allocation5] sm:$0xff] %vm230_vm2, %v248_v32 }
 0x1fe   : > { %v255_v33 = vld [vmem:[#allocation3] sm:$0xff] }
 0x1ff   : > { %454 = vlog2.f32 %v255_v33 }
 0x202   : > { %v259_v37 = vld [vmem:[#allocation5] sm:$0xff] }
 0x209   : > { %v455_v34 = vpop.eup %454 }
 0x20a   : > { %v257_v36 = vmul.f32 0.6931472, %v455_v34 }
 0x20c   : > { %v258_v38 = vadd.f32 %v257_v36, %v254_v35 }
 0x20e   : > { %v260_v40 = vsub.f32 %v258_v38, %v259_v37  ;;  %v262_v41 = vmul.f32 500.0, %v258_v38 }
 0x210   : > { %v261_v42 = vmul.f32 0.9, %v260_v40  ;;  %v264_v43 = vsub.f32 %v262_v41, %v263_v39 }
 0x212   : > { %v265_v44 = vmul.f32 0.0002, %v264_v43 }
 0x214   : > { %v266_v45 = vadd.f32 %v265_v44, %v261_v42 }
 0x216   : > { %267 = vst.msk [vmem:[%s702_s24] sm:$0xff] %vm230_vm2, %v266_v45 }
 0x217 PF: > { %s15_s16 = sadd.s32 1, %s552_s16   ;;  %s748_s9 = smov %s528_s10 }
 0x218   : > { %p12_p12 = scmp.ge.s32.totalorder %s15_s16, 10   ;;  %s749_s10 = smov %s532_s11 }
 0x219   : > { %s750_s11 = smov %s640_s29  ;;  %s751_s12 = smov %s544_s14 }
 0x21a   : > { %s752_s13 = smov %s548_s15  ;;  %s753_s14 = smov %s756_s18 }
 0x21b   : > { %s754_s15 = smov %s760_s19  ;;  %14 = sbr.rel (!%p12_p12) target bundleno = 5 (0x5), region = 79 }
 0x222   :  { %287 = vsyncpa [#allocation7], 1 }
 0x223   :  { %289 = vsyncpa [#allocation7 + $0x1], 1 }

</bundles_post_ra>
